<compile_context>
chip_gen: v7x
topology: tpu7x:2x2x1
jax: 0.10.0
libtpu: 0.0.40
codegen_flags: <defaults>
</compile_context>

<pallas_src>
from typing import NamedTuple

import jax
import jax.numpy as jnp
from jax.experimental import pallas as pl
from jax.experimental.pallas import tpu as pltpu

HIDDEN = 128
LANE = 128


def _round_up(n, m):
    return pl.cdiv(n, m) * m


# --------------------------------------------------------------------------- kernel
def _policy_kernel(x_ref, w1_ref, w2_ref, bias_ref, out_ref):
    """Two MXU matmuls (f32 accumulation), bias add + ReLU on the VPU.

    x arrives in f32 and is cast to the compute dtype here (single f32 HBM read of x
    instead of read-f32 + write-bf16 + read-bf16 in the wrapper). Rows of a ragged
    tail tile may contain garbage, but batch is not a contraction dim so garbage only
    lands in output rows that Mosaic masks on store.
    """
    hidden = w1_ref.shape[1]
    n_pad = w2_ref.shape[1]

    x = x_ref[...].astype(w1_ref.dtype)                       # in-kernel cast (no-op for f32)
    h = jnp.dot(x, w1_ref[...], preferred_element_type=jnp.float32)
    h = jnp.maximum(h + bias_ref[0:1, 0:hidden], 0.0)         # b1 add + ReLU, f32
    h = h.astype(w2_ref.dtype)                                # back to compute dtype for MXU
    o = jnp.dot(h, w2_ref[...], preferred_element_type=jnp.float32)
    o = o + bias_ref[1:2, 0:n_pad]                            # b2 add, f32
    out_ref[...] = o.astype(out_ref.dtype)                    # full-lane (128-mult) store


# --------------------------------------------------------------------------- params
class PolicyParams(NamedTuple):
    """Padded / pre-cast parameters. Build once with prepare_params()."""
    w1: jax.Array        # (in_pad, 128)  compute dtype, contraction rows zero-padded
    w2: jax.Array        # (128, n_pad)   compute dtype, action lanes zero-padded
    bias: jax.Array      # (2, cols) f32: row 0 = b1, row 1 = b2 (packed -> one DMA)
    input_size: int
    n_actions: int


def prepare_params(w1, b1, w2, b2, compute_dtype=jnp.bfloat16):
    """Hoisted one-time prep: zero-pad + cast weights, pack biases.

    Weights are stored transposed vs. PyTorch: w1 (input_size, 128), w2 (128, n_actions).
    Zero padding of the contraction rows / action lanes does not change the math.
    """
    input_size, hidden = w1.shape
    n_actions = w2.shape[1]
    in_pad = _round_up(input_size, 8)                         # contraction-dim alignment
    n_pad = _round_up(max(n_actions, LANE), LANE)             # lane-dense output (>=128)
    bias_cols = max(hidden, n_pad)

    w1_p = jnp.zeros((in_pad, hidden), compute_dtype)
    w1_p = w1_p.at[:input_size, :].set(w1.astype(compute_dtype))
    w2_p = jnp.zeros((hidden, n_pad), compute_dtype)
    w2_p = w2_p.at[:, :n_actions].set(w2.astype(compute_dtype))
    bias = jnp.zeros((2, bias_cols), jnp.float32)
    bias = bias.at[0, :hidden].set(b1.reshape(-1).astype(jnp.float32))
    bias = bias.at[1, :n_actions].set(b2.reshape(-1).astype(jnp.float32))
    return PolicyParams(w1=w1_p, w2=w2_p, bias=bias,
                        input_size=input_size, n_actions=n_actions)


# --------------------------------------------------------------------------- forward
def _xla_forward_padded(x, params):
    """Tiny-batch fallback: one fused XLA dot chain, returns padded (B, n_pad) f32."""
    in_pad, hidden = params.w1.shape
    n_pad = params.w2.shape[1]
    if x.shape[1] != in_pad:
        x = jnp.pad(x, ((0, 0), (0, in_pad - x.shape[1])))
    cdt = params.w1.dtype
    h = jnp.dot(x.astype(cdt), params.w1, preferred_element_type=jnp.float32)
    h = jnp.maximum(h + params.bias[0:1, :hidden], 0.0).astype(cdt)
    o = jnp.dot(h, params.w2, preferred_element_type=jnp.float32)
    return o + params.bias[1:2, :n_pad]


def policy_network_forward(x, params, *, out_dtype=jnp.float32, block_b=4096,
                           return_padded=False, xla_fallback_rows=32):
    """x: (B, input_size) f32 -> logits (B, n_actions) in out_dtype.

    Set return_padded=True (and out_dtype=jnp.bfloat16) to consume the lane-dense
    (B, n_pad) block downstream and skip the slice pass — cheapest on v5e.
    """
    B, input_size = x.shape
    if input_size != params.input_size:
        raise ValueError("input_size mismatch with prepared params")
    in_pad, hidden = params.w1.shape
    n_pad = params.w2.shape[1]
    bias_cols = params.bias.shape[1]

    # Tiny batch (e.g. single-env action selection): pallas_call fixed cost loses to XLA.
    if B < xla_fallback_rows:
        out_padded = _xla_forward_padded(x, params).astype(out_dtype)
        return out_padded if return_padded else out_padded[:, :params.n_actions]

    # Only per-call prep: zero-pad the contraction dim when input_size % 8 != 0.
    # Zero-fill (not garbage) is required — padded x columns hit real output rows.
    if in_pad != input_size:
        x = jnp.pad(x, ((0, 0), (0, in_pad - input_size)))

    # ---- batch tiling: 16-row alignment for bf16 sublane packing, balanced tiles,
    #      and grid_b >= 2 whenever possible so both v7x TensorCores get work.
    align = 16 if params.w1.dtype == jnp.bfloat16 else 8
    b_al = _round_up(B, align)
    num_tiles = pl.cdiv(b_al, block_b)
    if num_tiles < 2 and b_al >= 2 * align:
        num_tiles = 2
    tb = _round_up(pl.cdiv(b_al, num_tiles), align)
    grid_b = pl.cdiv(B, tb)                 # ragged tail tile is masked by Mosaic

    # ---- cost hint for the XLA scheduler
    flops = 2 * B * (input_size * hidden + hidden * params.n_actions)
    bytes_accessed = (x.size * x.dtype.itemsize
                      + params.w1.size * params.w1.dtype.itemsize
                      + params.w2.size * params.w2.dtype.itemsize
                      + params.bias.size * 4
                      + B * n_pad * jnp.dtype(out_dtype).itemsize)
    cost = pl.CostEstimate(flops=flops, transcendentals=0, bytes_accessed=bytes_accessed)

    out_padded = pl.pallas_call(
        _policy_kernel,
        out_shape=jax.ShapeDtypeStruct((B, n_pad), out_dtype),
        grid=(grid_b,),
        in_specs=[
            pl.BlockSpec((tb, in_pad), lambda i: (i, 0)),       # x: batch-tiled, f32
            pl.BlockSpec((in_pad, hidden), lambda i: (0, 0)),   # w1: resident
            pl.BlockSpec((hidden, n_pad), lambda i: (0, 0)),    # w2: resident
            pl.BlockSpec((2, bias_cols), lambda i: (0, 0)),     # packed biases: resident
        ],
        out_specs=pl.BlockSpec((tb, n_pad), lambda i: (i, 0)),
        compiler_params=pltpu.CompilerParams(
            dimension_semantics=("parallel",)),                 # megacore over batch tiles
        cost_estimate=cost,
    )(x, params.w1, params.w2, params.bias)

    return out_padded if return_padded else out_padded[:, :params.n_actions]


# --------------------------------------------------------------------------- helpers
def init_params(key, input_size, n_actions):
    """Deterministic init mimicking PyTorch nn.Linear default (uniform +-1/sqrt(fan_in))."""
    k1, k2, k3, k4 = jax.random.split(key, 4)
    lim1 = 1.0 / jnp.sqrt(jnp.float32(input_size))
    lim2 = 1.0 / jnp.sqrt(jnp.float32(HIDDEN))
    w1 = jax.random.uniform(k1, (input_size, HIDDEN), jnp.float32, -lim1, lim1)
    b1 = jax.random.uniform(k2, (1, HIDDEN), jnp.float32, -lim1, lim1)
    w2 = jax.random.uniform(k3, (HIDDEN, n_actions), jnp.float32, -lim2, lim2)
    b2 = jax.random.uniform(k4, (1, n_actions), jnp.float32, -lim2, lim2)
    return w1, b1, w2, b2


def reference_forward(x, w1, b1, w2, b2):
    """Plain-JAX reference (same math as the PyTorch module)."""
    return jnp.maximum(x @ w1 + b1, 0.0) @ w2 + b2


# --------------------------------------------------------------------------- main
if __name__ == "__main__":
    key = jax.random.PRNGKey(0)
    k_in, k_in2, k_param = jax.random.split(key, 3)

    input_size = 4     # e.g. CartPole observation dim
    n_actions = 2      # e.g. CartPole action dim

    w1, b1, w2, b2 = init_params(k_param, input_size, n_actions)

    # One-time prep (hoisted out of the per-call path).
    params_bf16 = prepare_params(w1, b1, w2, b2)                              # shipping path
    params_f32 = prepare_params(w1, b1, w2, b2, compute_dtype=jnp.float32)    # checks only

    # 1) rollout-sized batch through the Pallas path (grid_b >= 2 -> both v7x cores busy).
    x = jax.random.normal(k_in, (256, input_size), jnp.float32)
    ref = reference_forward(x, w1, b1, w2, b2)

    out_f32 = jax.block_until_ready(policy_network_forward(x, params_f32))
    assert out_f32.shape == (256, n_actions)
    assert jnp.allclose(out_f32, ref, atol=1e-4, rtol=1e-4)

    out_bf16 = jax.block_until_ready(policy_network_forward(x, params_bf16))
    assert out_bf16.shape == (256, n_actions)
    assert jnp.allclose(out_bf16, ref, atol=5e-2, rtol=5e-2)

    # Lane-padded bf16 logits: downstream masks lanes >= n_actions, no slice pass.
    out_pad = jax.block_until_ready(
        policy_network_forward(x, params_bf16, out_dtype=jnp.bfloat16, return_padded=True))
    assert out_pad.shape == (256, LANE) and out_pad.dtype == jnp.bfloat16
    assert jnp.allclose(out_pad[:, :n_actions].astype(jnp.float32), ref,
                        atol=5e-2, rtol=5e-2)

    # 2) ragged batch exercises the masked tail tile (no batch padding materialized).
    x_rag = jax.random.normal(k_in2, (100, input_size), jnp.float32)
    out_rag = jax.block_until_ready(policy_network_forward(x_rag, params_bf16))
    assert out_rag.shape == (100, n_actions)
    assert jnp.allclose(out_rag, reference_forward(x_rag, w1, b1, w2, b2),
                        atol=5e-2, rtol=5e-2)

    # 3) tiny batch (single-env action selection) takes the plain-XLA fallback.
    out_tiny = jax.block_until_ready(policy_network_forward(x[:2], params_bf16))
    assert out_tiny.shape == (2, n_actions)
    assert jnp.allclose(out_tiny, ref[:2], atol=5e-2, rtol=5e-2)

    print("KERNEL_OK")
</pallas_src>

<mosaic_0001>
module attributes {stable_mosaic.version = 11 : i64} {
  func.func @_policy_kernel(%arg0: i32, %arg1: memref<128x8xf32, #tpu.memory_space<vmem>>, %arg2: memref<8x128xf32, #tpu.memory_space<vmem>>, %arg3: memref<128x128xf32, #tpu.memory_space<vmem>>, %arg4: memref<2x128xf32, #tpu.memory_space<vmem>>, %arg5: memref<128x128xf32, #tpu.memory_space<vmem>>) attributes {dimension_semantics = [#tpu.dimension_semantics<parallel>], iteration_bounds = array<i64: 2>, scalar_prefetch = 0 : i64, scratch_operands = 0 : i64, tpu.core_type = #tpu.core_type<tc>, window_params = [{transform_indices = @transform_0, window_bounds = array<i64: 128, 8>}, {pipeline_mode = #tpu.pipeline_mode<synchronous>, transform_indices = @transform_1, window_bounds = array<i64: 8, 128>}, {pipeline_mode = #tpu.pipeline_mode<synchronous>, transform_indices = @transform_2, window_bounds = array<i64: 128, 128>}, {pipeline_mode = #tpu.pipeline_mode<synchronous>, transform_indices = @transform_3, window_bounds = array<i64: 2, 128>}, {transform_indices = @transform_4, window_bounds = array<i64: 128, 128>}]} {
    %c0 = arith.constant 0 : index
    %c0_0 = arith.constant 0 : index
    %0 = vector.load %arg1[%c0, %c0_0] : memref<128x8xf32, #tpu.memory_space<vmem>>, vector<128x8xf32>
    %c0_1 = arith.constant 0 : index
    %c0_2 = arith.constant 0 : index
    %1 = vector.load %arg2[%c0_1, %c0_2] : memref<8x128xf32, #tpu.memory_space<vmem>>, vector<8x128xf32>
    %cst = arith.constant dense<0.000000e+00> : vector<128x128xf32>
    %2 = tpu.matmul %0, %1, %cst {dimension_numbers = #tpu.dot_dimension_numbers<[1], [0], [0], [1], [0, 0, 1, 1], [], []>} : vector<128x8xf32>, vector<8x128xf32>, vector<128x128xf32> -> vector<128x128xf32>
    %c0_3 = arith.constant 0 : index
    %c0_4 = arith.constant 0 : index
    %3 = vector.load %arg4[%c0_3, %c0_4] : memref<2x128xf32, #tpu.memory_space<vmem>>, vector<1x128xf32>
    %4 = vector.broadcast %3 : vector<1x128xf32> to vector<128x128xf32>
    %5 = arith.addf %2, %4 : vector<128x128xf32>
    %cst_5 = arith.constant 0.000000e+00 : f32
    %6 = vector.broadcast %cst_5 : f32 to vector<128x128xf32>
    %7 = arith.maximumf %5, %6 : vector<128x128xf32>
    %c0_6 = arith.constant 0 : index
    %c0_7 = arith.constant 0 : index
    %8 = vector.load %arg3[%c0_6, %c0_7] : memref<128x128xf32, #tpu.memory_space<vmem>>, vector<128x128xf32>
    %cst_8 = arith.constant dense<0.000000e+00> : vector<128x128xf32>
    %9 = tpu.matmul %7, %8, %cst_8 {dimension_numbers = #tpu.dot_dimension_numbers<[1], [0], [0], [1], [0, 0, 1, 1], [], []>} : vector<128x128xf32>, vector<128x128xf32>, vector<128x128xf32> -> vector<128x128xf32>
    %c1 = arith.constant 1 : index
    %c0_9 = arith.constant 0 : index
    %10 = vector.load %arg4[%c1, %c0_9] : memref<2x128xf32, #tpu.memory_space<vmem>>, vector<1x128xf32>
    %11 = vector.broadcast %10 : vector<1x128xf32> to vector<128x128xf32>
    %12 = arith.addf %9, %11 : vector<128x128xf32>
    %c0_10 = arith.constant 0 : index
    %c0_11 = arith.constant 0 : index
    %13 = vector.load %arg5[%c0_10, %c0_11] : memref<128x128xf32, #tpu.memory_space<vmem>>, vector<128x128xf32>
    tpu.vector_store %arg5[%c0_10, %c0_11], %12 {strides = array<i32>} : memref<128x128xf32, #tpu.memory_space<vmem>>, vector<128x128xf32>,
    return
  }
  func.func @transform_0(%arg0: i32) -> (i32, i32) {
    %c0_i32 = arith.constant 0 : i32
    %c0_i32_0 = arith.constant 0 : i32
    return %arg0, %c0_i32 : i32, i32
  }
  func.func @transform_1(%arg0: i32) -> (i32, i32) {
    %c0_i32 = arith.constant 0 : i32
    %c0_i32_0 = arith.constant 0 : i32
    %c0_i32_1 = arith.constant 0 : i32
    return %c0_i32, %c0_i32_0 : i32, i32
  }
  func.func @transform_2(%arg0: i32) -> (i32, i32) {
    %c0_i32 = arith.constant 0 : i32
    %c0_i32_0 = arith.constant 0 : i32
    %c0_i32_1 = arith.constant 0 : i32
    return %c0_i32, %c0_i32_0 : i32, i32
  }
  func.func @transform_3(%arg0: i32) -> (i32, i32) {
    %c0_i32 = arith.constant 0 : i32
    %c0_i32_0 = arith.constant 0 : i32
    %c0_i32_1 = arith.constant 0 : i32
    return %c0_i32, %c0_i32_0 : i32, i32
  }
  func.func @transform_4(%arg0: i32) -> (i32, i32) {
    %c0_i32 = arith.constant 0 : i32
    %c0_i32_0 = arith.constant 0 : i32
    return %arg0, %c0_i32 : i32, i32
  }
}

</mosaic_0001>

<bundles_post_ra>
// kernel: tpu_custom_call.1
= control target key start
LH: loop header
LB: loop body
LE: loop exit
PB: predicated region body
PF: predicated region fallthrough
CT: control target
= control target key end

     0   :  { %9 = vsyncpa [#allocation3], 0  ;;  %s1248_s0 = inlined_call_operand.vmem [shape: f32[256,8], index: 0, kind: input, shape index: {}]   ;;  %s1249_s1 = inlined_call_operand.vmem [shape: f32[8,128], index: 1, kind: input, shape index: {}]   ;;  %s1250_s2 = inlined_call_operand.vmem [shape: f32[128,128], index: 2, kind: input, shape index: {}]   ;;  %s1251_s3 = inlined_call_operand.vmem [shape: f32[2,128], index: 3, kind: input, shape index: {}]   ;;  %s1252_s4 = inlined_call_operand.hbm [shape: f32[256,128], index: 4, kind: output, shape index: {}]  }
   0x1   :  { %11 = vsyncpa [#allocation3 + $0x1], 0  ;;  %s1032_s15 = smov 0   ;;  %s1034_s16 = smov 0  }
   0x2   :  { %s1036_s17 = smov 0   ;;  %s1038_s18 = smov 0  }
   0x3 LB: > { %s1053_s19 = sadd.s32 4294967295, %s1002_s18   ;;  %s689_s20 = sadd.s32 4294967294, %s1002_s18   ;;  %s1002_s18 = sphi %s1038_s18, %s1258_s18   ;;  %s998_s17 = sphi %s1036_s17, %s1257_s17   ;;  %s994_s16 = sphi %s1034_s16, %s1256_s16   ;;  %s990_s15 = sphi %s1032_s15, %s1255_s15  }
   0x4   : > { %s1057_s21 = sadd.s32 1, %s1002_s18   ;;  %s113_s22 = sadd.s32 1, %s998_s17 }
   0x5   : > { %s110_s23 = ssub.s32 %s1002_s18, %s1057_s21  ;;  %p123_p0 = scmp.ne.s32.totalorder %s998_s17, %s994_s16 }
   0x6   : > { %p111_p1 = scmp.eq.s32.totalorder %s110_s23, 0  ;;  %p124_p2 = scmp.eq.s32.totalorder %s1053_s19, 1 }
   0x7   : > { %p129_p3 = scmp.ne.s32.totalorder %s994_s16, %s990_s15  ;;  %p130_p4 = scmp.eq.s32.totalorder %s689_s20, 1 }
   0x8   : > { %s1068_s24 = scalar_select %p111_p1, %s998_s17, %s113_s22  }
   0x9   : > { %p1070_p5 = por %p124_p2, %p123_p0  ;;  %p1074_p6 = por %p130_p4, %p129_p3 }
   0xa   : > { %p692_p7 = scmp.ge.s32.totalorder %s1002_s18, 1  ;;  %p166_p8 = scmp.lt.s32.totalorder %s1002_s18, 3 }
   0xc   : > { %p167_p9 = pnand %p692_p7, %p166_p8 }
   0xd   : > { %v215_v0 = vld [vmem:[%s1249_s1] sm:$0xff] (!%p167_p9)  ;;  %s694_s29 = sshll.u32 (!%p167_p9), %s1053_s19, 4  ;;  %v432_v2 = vld [vmem:[%s1250_s2 + $0x8] sm:$0xff] (!%p167_p9)  ;;  %v433_v4 = vld [vmem:[%s1250_s2 + $0x10] sm:$0xff] (!%p167_p9)  ;;  %vm221_vm0 = vcmask (!%p167_p9), 64512   ;;  %s719_s13 = sshll.u32 (!%p167_p9), %s1053_s19, 11 }
   0xe   : > { %170 = sbr.rel (%p167_p9) target bundleno = 502 (0x1f6), region = 36  ;;  %v431_v1 = vld [vmem:[%s1250_s2] sm:$0xff] (!%p167_p9)  ;;  %769 = vmatprep.subr.mxu0 (!%p167_p9), %v215_v0  ;;  %p193_p10 = scmp.lt.s32.totalorder (!%p167_p9), %s694_s29, 31  ;;  %v434_v5 = vld [vmem:[%s1250_s2 + $0x18] sm:$0xff] (!%p167_p9)  ;;  %v436_v8 = vld [vmem:[%s1250_s2 + $0x28] sm:$0xff] (!%p167_p9) }
   0xf   : > { %v851_v3 = vpack.c.bf16 (!%p167_p9), %v432_v2, %v431_v1  ;;  %770 = vmatpush3.msra.mxu0 (!%p167_p9), %v215_v0  ;;  %v855_v6 = vpack.c.bf16 (!%p167_p9), %v434_v5, %v433_v4  ;;  %v435_v7 = vld [vmem:[%s1250_s2 + $0x20] sm:$0xff] (!%p167_p9)  ;;  %v437_v13 = vld [vmem:[%s1250_s2 + $0x30] sm:$0xff] (!%p167_p9)  ;;  %v438_v14 = vld [vmem:[%s1250_s2 + $0x38] sm:$0xff] (!%p167_p9)  ;;  %s1199_s23 = scalar_lea.hbm (!%p167_p9), %s1252_s4, %s719_s13  ;;  %s1004_s30 = smov (!%p167_p9), [#allocation2]  }
  0x10   : > { %v859_v12 = vpack.c.bf16 (!%p167_p9), %v436_v8, %v435_v7  ;;  %v863_v17 = vpack.c.bf16 (!%p167_p9), %v438_v14, %v437_v13  ;;  %v439_v18 = vld [vmem:[%s1250_s2 + $0x40] sm:$0xff] (!%p167_p9)  ;;  %v440_v19 = vld [vmem:[%s1250_s2 + $0x48] sm:$0xff] (!%p167_p9)  ;;  %v441_v23 = vld [vmem:[%s1250_s2 + $0x50] sm:$0xff] (!%p167_p9) }
  0x11   : > { %852 = vmatprep.subr.bf16.mxu0 (!%p167_p9), %v851_v3  ;;  %883 = vmatprep.subr.bf16.mxu1 (!%p167_p9), %v851_v3  ;;  %v867_v22 = vpack.c.bf16 (!%p167_p9), %v440_v19, %v439_v18  ;;  %v442_v24 = vld [vmem:[%s1250_s2 + $0x58] sm:$0xff] (!%p167_p9)  ;;  %v443_v28 = vld [vmem:[%s1250_s2 + $0x60] sm:$0xff] (!%p167_p9)  ;;  %v444_v29 = vld [vmem:[%s1250_s2 + $0x68] sm:$0xff] (!%p167_p9) }
  0x12   : > { %891 = vmatpush3.bf16.msra.mxu1 (!%p167_p9), %v851_v3  ;;  %v871_v27 = vpack.c.bf16 (!%p167_p9), %v442_v24, %v441_v23  ;;  %v875_v32 = vpack.c.bf16 (!%p167_p9), %v444_v29, %v443_v28  ;;  %v445_v38 = vld [vmem:[%s1250_s2 + $0x70] sm:$0xff] (!%p167_p9)  ;;  %v446_v39 = vld [vmem:[%s1250_s2 + $0x78] sm:$0xff] (!%p167_p9)  ;;  %v696_v41 = vld [vmem:[%s1251_s3] ss:$0 sm:$0xff] (!%p167_p9) }
  0x13   : > { %884 = vmatprep.subr.bf16.mxu1 (!%p167_p9), %v855_v6  ;;  %v879_v40 = vpack.c.bf16 (!%p167_p9), %v446_v39, %v445_v38 }
  0x15   : > { %s1260_s29 = smov (!%p193_p10, %s694_s29), 31 }
  0x16   : > { %s695_s22 = sshll.u32 %s1260_s29, 3  ;;  %892 = vmatpush3.bf16.msra.mxu1 %v855_v6  ;;  %s944_s29 = sshll.u32 %s1004_s30, 4  ;;  %s945_s29 = int_to_ptr.vmem [resolvable:$false] %s944_s29 }
  0x17   : > { %s1105_s28 = scalar_lea.vmem %s1248_s0, %s695_s22  ;;  %885 = vmatprep.subr.bf16.mxu1 %v859_v12  ;;  %s946_s5 = scalar_lea.vmem %s945_s29, 4096 }
  0x18   : > { %v199_v9 = vld [vmem:[%s1105_s28] sm:$0xff]  ;;  %v200_v10 = vld [vmem:[%s1105_s28 + $0x8] sm:$0xff]  ;;  %v201_v11 = vld [vmem:[%s1105_s28 + $0x10] sm:$0xff] }
  0x19   : > { %771 = vmatprep.mubr.msk.f32.mxu0 %vm221_vm0, %v199_v9  ;;  %v202_v15 = vld [vmem:[%s1105_s28 + $0x18] sm:$0xff]  ;;  %v203_v16 = vld [vmem:[%s1105_s28 + $0x20] sm:$0xff]  ;;  %v204_v20 = vld [vmem:[%s1105_s28 + $0x28] sm:$0xff] }
  0x1a   : > { %772 = vmatmul.mubr.msk.f32.vlgmr.msra.gmra.mrb[0].mxu0 %vm221_vm0, %v200_v10  ;;  %893 = vmatpush3.bf16.msra.mxu1 %v859_v12  ;;  %v205_v21 = vld [vmem:[%s1105_s28 + $0x30] sm:$0xff]  ;;  %v206_v25 = vld [vmem:[%s1105_s28 + $0x38] sm:$0xff]  ;;  %v207_v26 = vld [vmem:[%s1105_s28 + $0x40] sm:$0xff] }
  0x1b   : > { %774 = vmatprep.mubr.msk.f32.mxu0 %vm221_vm0, %v201_v11  ;;  %854 = vmatpush3.bf16.msra.mxu0 %v851_v3  ;;  %v208_v30 = vld [vmem:[%s1105_s28 + $0x48] sm:$0xff]  ;;  %v209_v31 = vld [vmem:[%s1105_s28 + $0x50] sm:$0xff]  ;;  %v210_v33 = vld [vmem:[%s1105_s28 + $0x58] sm:$0xff] }
  0x1c   : > { %856 = vmatprep.subr.bf16.mxu0 %v855_v6  ;;  %886 = vmatprep.subr.bf16.mxu1 %v863_v17  ;;  %v211_v34 = vld [vmem:[%s1105_s28 + $0x60] sm:$0xff]  ;;  %v212_v35 = vld [vmem:[%s1105_s28 + $0x68] sm:$0xff]  ;;  %v213_v36 = vld [vmem:[%s1105_s28 + $0x70] sm:$0xff] }
  0x1d   : > { %v214_v37 = vld [vmem:[%s1105_s28 + $0x78] sm:$0xff]  ;;  %s189_s28 = sand.u32 1, %s994_s16  }
  0x1e   : > { %775 = vmatmul.mubr.msk.f32.gmra.mrb[2].mxu0 %vm221_vm0, %v202_v15  ;;  %894 = vmatpush3.bf16.msra.mxu1 %v863_v17  ;;  %s693_s9 = sshll.u32 %s189_s28, 7  ;;  %s1207_s19 = scalar_lea.sflag [#allocation3], %s189_s28 }
  0x1f   : > { %777 = vmatprep.mubr.msk.f32.mxu0 %vm221_vm0, %v203_v16  ;;  %858 = vmatpush3.bf16.msra.mxu0 %v855_v6  ;;  %s1178_s12 = scalar_lea.vmem [#allocation2], %s693_s9 }
  0x20   : > { %860 = vmatprep.subr.bf16.mxu0 %v859_v12  ;;  %887 = vmatprep.subr.bf16.mxu1 %v867_v22  ;;  %s627_s14 = sshll.u32 %s1178_s12, 4  ;;  %s1201_s14 = int_to_ptr.vmem [resolvable:$true] %s627_s14 }
  0x21   : > { %s940_s27 = scalar_lea.vmem %s1201_s14, 2048  ;;  %p947_p0 = scmp.lt.s32.totalorder %s1201_s14, %s945_s29 }
  0x22   : > { %778 = vmatmul.mubr.msk.f32.gmra.mrb[4].mxu0 %vm221_vm0, %v204_v20  ;;  %895 = vmatpush3.bf16.msra.mxu1 %v867_v22  ;;  %p941_p11 = scmp.ne.s32.totalorder %s1201_s14, %s940_s27  ;;  %p948_p1 = scmp.lt.s32.totalorder %s946_s5, %s940_s27 }
  0x23   : > { %780 = vmatprep.mubr.msk.f32.mxu0 %vm221_vm0, %v205_v21  ;;  %862 = vmatpush3.bf16.msra.mxu0 %v859_v12 }
  0x24   : > { %864 = vmatprep.subr.bf16.mxu0 %v863_v17  ;;  %888 = vmatprep.subr.bf16.mxu1 %v871_v27  ;;  %p942_p12 = pnand %p941_p11, %p1070_p5  ;;  %p949_p2 = por %p948_p1, %p947_p0 }
  0x26   : > { %781 = vmatmul.mubr.msk.f32.gmra.mrb[6].mxu0 %vm221_vm0, %v206_v25  ;;  %896 = vmatpush3.bf16.msra.mxu1 %v871_v27  ;;  %p943_p13 = pneg %p942_p12 }
  0x27   : > { %783 = vmatprep.mubr.msk.f32.mxu0 %vm221_vm0, %v207_v26  ;;  %866 = vmatpush3.bf16.msra.mxu0 %v863_v17  ;;  %v713_v26 = vld [vmem:[%s1251_s3 + $0x1] ss:$0 sm:$0xff] }
  0x28   : > { %868 = vmatprep.subr.bf16.mxu0 %v867_v22  ;;  %889 = vmatprep.subr.bf16.mxu1 %v875_v32  ;;  %p950_p3 = pnand %p949_p2, %p943_p13 }
  0x2a   : > { %784 = vmatmul.mubr.msk.f32.gmra.mrb[8].mxu0 %vm221_vm0, %v208_v30  ;;  %897 = vmatpush3.bf16.msra.mxu1 %v875_v32 }
  0x2b   : > { %786 = vmatprep.mubr.msk.f32.mxu0 %vm221_vm0, %v209_v31  ;;  %870 = vmatpush3.bf16.msra.mxu0 %v867_v22 }
  0x2c   : > { %872 = vmatprep.subr.bf16.mxu0 %v871_v27  ;;  %890 = vmatprep.subr.bf16.mxu1 %v879_v40 }
  0x2e   : > { %787 = vmatmul.mubr.msk.f32.gmra.mrb[10].mxu0 %vm221_vm0, %v210_v33  ;;  %898 = vmatpush3.bf16.msra.mxu1 %v879_v40 }
  0x2f   : > { %789 = vmatprep.mubr.msk.f32.mxu0 %vm221_vm0, %v211_v34  ;;  %874 = vmatpush3.bf16.msra.mxu0 %v871_v27 }
  0x30   : > { %876 = vmatprep.subr.bf16.mxu0 %v875_v32 }
  0x32   : > { %790 = vmatmul.mubr.msk.f32.gmra.mrb[12].mxu0 %vm221_vm0, %v212_v35 }
  0x33   : > { %792 = vmatprep.mubr.msk.f32.mxu0 %vm221_vm0, %v213_v36  ;;  %878 = vmatpush3.bf16.msra.mxu0 %v875_v32 }
  0x34   : > { %880 = vmatprep.subr.bf16.mxu0 %v879_v40 }
  0x36   : > { %793 = vmatmul.mubr.msk.f32.gmra.mrb[14].mxu0 %vm221_vm0, %v214_v37 }
  0x37   : > { %882 = vmatpush3.bf16.msra.mxu0 %v879_v40 }
  0xed   : > { %v773_v42 = vpop.f32.mrb[0].mxu0 }
  0xee   : > { %v342_v43 = vadd.f32 %v773_v42, %v696_v41  ;;  %v336_v44 = vpop.f32.mrb[1].mxu0 }
  0xef   : > { %v337_v45 = vadd.f32 %v696_v41, %v336_v44 }
  0xf0   : > { %v416_v48 = vmax.f32 %v342_v43, 0.0 }
  0xf1   : > { %v415_v46 = vmax.f32 %v337_v45, 0.0  ;;  %v776_v47 = vpop.f32.mrb[2].mxu0 }
  0xf2   : > { %v352_v49 = vadd.f32 %v776_v47, %v696_v41  ;;  %v346_v50 = vpop.f32.mrb[3].mxu0 }
  0xf3   : > { %v347_v51 = vadd.f32 %v696_v41, %v346_v50  ;;  %827 = vmatprep.mubr.f32.mxu0 %v415_v46 }
  0xf4   : > { %828 = vmatmul.mubr.f32.vlgmr.msra.gmra.mrb[16].mxu0 %v416_v48  ;;  %v418_v54 = vmax.f32 %v352_v49, 0.0 }
  0xf5   : > { %v417_v52 = vmax.f32 %v347_v51, 0.0  ;;  %v779_v53 = vpop.f32.mrb[4].mxu0 }
  0xf6   : > { %v362_v55 = vadd.f32 %v779_v53, %v696_v41  ;;  %v356_v56 = vpop.f32.mrb[5].mxu0 }
  0xf7   : > { %v357_v57 = vadd.f32 %v696_v41, %v356_v56  ;;  %830 = vmatprep.mubr.f32.mxu0 %v417_v52 }
  0xf8   : > { %831 = vmatmul.mubr.f32.gmra.mrb[18].mxu0 %v418_v54  ;;  %v420_v60 = vmax.f32 %v362_v55, 0.0 }
  0xf9   : > { %v419_v58 = vmax.f32 %v357_v57, 0.0  ;;  %v782_v59 = vpop.f32.mrb[6].mxu0 }
  0xfa   : > { %v372_v61 = vadd.f32 %v782_v59, %v696_v41  ;;  %v366_v62 = vpop.f32.mrb[7].mxu0 }
  0xfb   : > { %833 = vmatprep.mubr.f32.mxu0 %v419_v58  ;;  %v367_v63 = vadd.f32 %v696_v41, %v366_v62 }
  0xfc   : > { %834 = vmatmul.mubr.f32.gmra.mrb[20].mxu0 %v420_v60  ;;  %v422_v2 = vmax.f32 %v372_v61, 0.0 }
  0xfd   : > { %v785_v0 = vpop.f32.mrb[8].mxu0  ;;  %v421_v1 = vmax.f32 %v367_v63, 0.0 }
  0xfe   : > { %v382_v3 = vadd.f32 %v785_v0, %v696_v41  ;;  %v376_v4 = vpop.f32.mrb[9].mxu0 }
  0xff   : > { %v377_v5 = vadd.f32 %v696_v41, %v376_v4  ;;  %836 = vmatprep.mubr.f32.mxu1 %v421_v1 }
 0x100   : > { %837 = vmatmul.mubr.f32.vlgmr.msra.gmra.mrb[0].mxu1 %v422_v2  ;;  %v424_v8 = vmax.f32 %v382_v3, 0.0 }
 0x101   : > { %v423_v6 = vmax.f32 %v377_v5, 0.0  ;;  %v788_v7 = vpop.f32.mrb[10].mxu0 }
 0x102   : > { %v392_v9 = vadd.f32 %v788_v7, %v696_v41  ;;  %v386_v10 = vpop.f32.mrb[11].mxu0 }
 0x103   : > { %v387_v11 = vadd.f32 %v696_v41, %v386_v10  ;;  %839 = vmatprep.mubr.f32.mxu1 %v423_v6 }
 0x104   : > { %840 = vmatmul.mubr.f32.gmra.mrb[2].mxu1 %v424_v8  ;;  %v426_v14 = vmax.f32 %v392_v9, 0.0 }
 0x105   : > { %v425_v12 = vmax.f32 %v387_v11, 0.0  ;;  %v791_v13 = vpop.f32.mrb[12].mxu0 }
 0x106   : > { %v402_v15 = vadd.f32 %v791_v13, %v696_v41  ;;  %v396_v16 = vpop.f32.mrb[13].mxu0 }
 0x107   : > { %v397_v17 = vadd.f32 %v696_v41, %v396_v16  ;;  %842 = vmatprep.mubr.f32.mxu1 %v425_v12 }
 0x108   : > { %843 = vmatmul.mubr.f32.gmra.mrb[4].mxu1 %v426_v14  ;;  %v428_v20 = vmax.f32 %v402_v15, 0.0 }
 0x109   : > { %v427_v18 = vmax.f32 %v397_v17, 0.0  ;;  %v794_v19 = vpop.f32.mrb[14].mxu0 }
 0x10a   : > { %v412_v21 = vadd.f32 %v794_v19, %v696_v41  ;;  %v406_v22 = vpop.f32.mrb[15].mxu0 }
 0x10b   : > { %v407_v23 = vadd.f32 %v696_v41, %v406_v22  ;;  %845 = vmatprep.mubr.f32.mxu1 %v427_v18 }
 0x10c   : > { %846 = vmatmul.mubr.f32.gmra.mrb[6].mxu1 %v428_v20  ;;  %v430_v25 = vmax.f32 %v412_v21, 0.0 }
 0x10d   : > { %v429_v24 = vmax.f32 %v407_v23, 0.0 }
 0x10f   : > { %848 = vmatprep.mubr.f32.mxu1 %v429_v24 }
 0x110   : > { %849 = vmatmul.mubr.f32.gmra.mrb[8].mxu1 %v430_v25 }
 0x1c7   : > { %v829_v27 = vpop.f32.mrb[16].mxu0 }
 0x1c8   : > { %v524_v28 = vadd.f32 %v829_v27, %v713_v26  ;;  %v518_v29 = vpop.f32.mrb[17].mxu0 }
 0x1c9   : > { %v519_v30 = vadd.f32 %v713_v26, %v518_v29 }
 0x1ca   : > { %598 = vst [vmem:[%s1178_s12 + $0x8] sm:$0xff] %v524_v28 }
 0x1cb   : > { %597 = vst [vmem:[%s1178_s12] sm:$0xff] %v519_v30  ;;  %v832_v31 = vpop.f32.mrb[18].mxu0 }
 0x1cc   : > { %v534_v32 = vadd.f32 %v832_v31, %v713_v26  ;;  %v528_v33 = vpop.f32.mrb[19].mxu0 }
 0x1cd   : > { %v529_v34 = vadd.f32 %v713_v26, %v528_v33 }
 0x1ce   : > { %600 = vst [vmem:[%s1178_s12 + $0x18] sm:$0xff] %v534_v32 }
 0x1cf   : > { %599 = vst [vmem:[%s1178_s12 + $0x10] sm:$0xff] %v529_v34  ;;  %v835_v35 = vpop.f32.mrb[20].mxu0 }
 0x1d0   : > { %v544_v36 = vadd.f32 %v835_v35, %v713_v26  ;;  %v538_v37 = vpop.f32.mrb[21].mxu0 }
 0x1d1   : > { %v539_v38 = vadd.f32 %v713_v26, %v538_v37 }
 0x1d2   : > { %602 = vst [vmem:[%s1178_s12 + $0x28] sm:$0xff] %v544_v36 }
 0x1d3   : > { %601 = vst [vmem:[%s1178_s12 + $0x20] sm:$0xff] %v539_v38  ;;  %v838_v39 = vpop.f32.mrb[0].mxu1 }
 0x1d4   : > { %v554_v40 = vadd.f32 %v838_v39, %v713_v26  ;;  %v548_v41 = vpop.f32.mrb[1].mxu1 }
 0x1d5   : > { %v549_v42 = vadd.f32 %v713_v26, %v548_v41 }
 0x1d6   : > { %604 = vst [vmem:[%s1178_s12 + $0x38] sm:$0xff] %v554_v40 }
 0x1d7   : > { %603 = vst [vmem:[%s1178_s12 + $0x30] sm:$0xff] %v549_v42  ;;  %v841_v43 = vpop.f32.mrb[2].mxu1 }
 0x1d8   : > { %v564_v44 = vadd.f32 %v841_v43, %v713_v26  ;;  %v558_v45 = vpop.f32.mrb[3].mxu1 }
 0x1d9   : > { %v559_v46 = vadd.f32 %v713_v26, %v558_v45 }
 0x1da   : > { %606 = vst [vmem:[%s1178_s12 + $0x48] sm:$0xff] %v564_v44 }
 0x1db   : > { %605 = vst [vmem:[%s1178_s12 + $0x40] sm:$0xff] %v559_v46  ;;  %v844_v47 = vpop.f32.mrb[4].mxu1 }
 0x1dc   : > { %v574_v48 = vadd.f32 %v844_v47, %v713_v26  ;;  %v568_v49 = vpop.f32.mrb[5].mxu1 }
 0x1dd   : > { %v569_v50 = vadd.f32 %v713_v26, %v568_v49 }
 0x1de   : > { %608 = vst [vmem:[%s1178_s12 + $0x58] sm:$0xff] %v574_v48 }
 0x1df   : > { %607 = vst [vmem:[%s1178_s12 + $0x50] sm:$0xff] %v569_v50  ;;  %v847_v51 = vpop.f32.mrb[6].mxu1 }
 0x1e0   : > { %v584_v52 = vadd.f32 %v847_v51, %v713_v26  ;;  %v578_v53 = vpop.f32.mrb[7].mxu1 }
 0x1e1   : > { %v579_v54 = vadd.f32 %v713_v26, %v578_v53 }
 0x1e2   : > { %610 = vst [vmem:[%s1178_s12 + $0x68] sm:$0xff] %v584_v52 }
 0x1e3   : > { %609 = vst [vmem:[%s1178_s12 + $0x60] sm:$0xff] %v579_v54  ;;  %v850_v55 = vpop.f32.mrb[8].mxu1 }
 0x1e4   : > { %v594_v56 = vadd.f32 %v850_v55, %v713_v26  ;;  %v588_v57 = vpop.f32.mrb[9].mxu1 }
 0x1e5   : > { %v589_v58 = vadd.f32 %v713_v26, %v588_v57 }
 0x1e6   : > { %612 = vst [vmem:[%s1178_s12 + $0x78] sm:$0xff] %v594_v56 }
 0x1e7   : > { %611 = vst [vmem:[%s1178_s12 + $0x70] sm:$0xff] %v589_v58 }
 0x1e8   : > { %953 = shalt.err (!%p950_p3)
}
 0x1e9   : > { %s954_s6 = scalar_lea.hbm %s1199_s23, 2048  ;;  %s958_s28 = scalar_lea.hbm %s1252_s4, 4096 }
 0x1ea   : > { %p955_p4 = scmp.ne.s32.totalorder %s1199_s23, %s954_s6  ;;  %p959_p9 = scmp.lt.u32.totalorder %s1199_s23, %s1252_s4 }
 0x1eb   : > { %p960_p10 = scmp.lt.u32.totalorder %s958_s28, %s954_s6  ;;  %p962_p12 = scmp.lt.u32.totalorder %s954_s6, %s1199_s23 }
 0x1ec   : > { %p956_p7 = pnand %p955_p4, %p1070_p5 }
 0x1ed   : > { %p961_p11 = por %p960_p10, %p959_p9 }
 0x1ee   : > { %p957_p8 = pneg %p956_p7 }
 0x1ef   : > { %p963_p13 = por %p962_p12, %p961_p11 }
 0x1f1   : > { %p964_p0 = pnand %p963_p13, %p957_p8 }
 0x1f3   : > { %967 = shalt.err (!%p964_p0)
}
 0x1f4   : > { %s1005_s11 = smov 128   ;;  %s1006_s12 = smov 8  }
 0x1f5   : > { %899 = dma.vmem_to_hbm [thread:$0]  (%p1070_p5), %s1201_s14, 2048, %s1199_s23, %s1207_s19, %s1005_s11, %s1005_s11, %s1006_s12  }
 0x1f6 PF: > { %p905_p1 = scmp.ge.s32.totalorder %s1002_s18, 2  ;;  %s642_s13 = sand.u32 1, %s990_s15  }
 0x1f7   : > { %s643_s20 = scalar_lea.sflag [#allocation3], %s642_s13 }
 0x1f8   : > { %p902_p2 = pnand %p905_p1, %p1074_p6 }
 0x1fa   : > { %985 = dma.done.wait (!%p902_p2), %s643_s20, 2048  }
 0x1fb   : > { %987 = vsyncadd (!%p902_p2), %s643_s20, 4294965248  ;;  %p14_p3 = scmp.ge.s32.totalorder %s1057_s21, 4   ;;  %s1255_s15 = smov %s994_s16 }
 0x1fc   : > { %s1256_s16 = smov %s998_s17  ;;  %s1257_s17 = smov %s1068_s24 }
 0x1fd   : > { %s1258_s18 = smov %s1057_s21  ;;  %16 = sbr.rel (!%p14_p3) target bundleno = 3 (0x3), region = 71 }
 0x204   :  { %648 = vsyncpa [#allocation3], 1 }
 0x205   :  { %650 = vsyncpa [#allocation3 + $0x1], 1 }

</bundles_post_ra>
